<compile_context>
chip_gen: v5e
topology: v5e:2x2
jax: 0.10.0
libtpu: 0.0.40
codegen_flags: <defaults>
</compile_context>

<pallas_src>
import functools

import jax
import jax.numpy as jnp
import numpy as np
from jax.experimental import pallas as pl
from jax.experimental.pallas import tpu as pltpu


# -----------------------------------------------------------------------------
# Parameter packing: a 3x3 HWIO conv weight becomes a stacked band matrix
# Mstk of shape (3*W*Ci, W*Co) with per-dy blocks M[dy]:
#
#     M[dy][(xi*Ci+ci), (xo*Co+co)] = w[dy, xi-xo+1, ci, co] if 0<=xi-xo+1<=2
#                                     else 0
#
# so that, with "row above" / "center" / "row below" activations u, v, d
# (each (M, W*Ci), zero rows at image boundaries):
#
#     out(M, W*Co) = concat([u, v, d], lanes) @ Mstk + bias_row
#
# Horizontal zero padding is folded into the band structure; vertical padding
# is realised with sublane rolls + boundary masks inside the kernel.
# -----------------------------------------------------------------------------
def _band_matrices(w, W):
    _, _, Ci, Co = w.shape
    xi = jnp.arange(W)[:, None]
    xo = jnp.arange(W)[None, :]
    dx = xi - xo + 1
    valid = ((dx >= 0) & (dx <= 2)).astype(w.dtype)
    dxc = jnp.clip(dx, 0, 2)
    mats = []
    for dy in range(3):
        m = w[dy][dxc] * valid[:, :, None, None]            # (W, W, Ci, Co)
        m = jnp.transpose(m, (0, 2, 1, 3)).reshape(W * Ci, W * Co)
        mats.append(m)
    # Stack the three dy bands along K and cast to bf16 for the MXU.
    return jnp.concatenate(mats, axis=0).astype(jnp.bfloat16)   # (3*W*Ci, W*Co)


def _row_bias(b, W):
    # lane index = x*Co + co  ->  bias row of shape (1, W*Co), kept in f32.
    return jnp.tile(b, W).reshape(1, W * b.shape[0]).astype(jnp.float32)


# -----------------------------------------------------------------------------
# In-kernel helpers (traced inside the Pallas kernel body).
# -----------------------------------------------------------------------------
def _boundary_masks(M, H):
    """(M,1) f32 masks zeroing rows whose 'above'/'below' row belongs to a
    different image (replaces explicit zero-padding rows)."""
    r = jax.lax.broadcasted_iota(jnp.int32, (M, 1), 0) % H
    not_top = (r != 0).astype(jnp.float32)        # first row of each image
    not_bot = (r != H - 1).astype(jnp.float32)    # last row of each image
    return not_top, not_bot


def _conv3x3(v, m_ref, b_ref, not_top, not_bot, relu):
    """3x3 'same' conv on row-stacked activations v (M, W*Ci) as ONE bf16 MXU
    matmul against the stacked band matrix (3*W*Ci, W*Co)."""
    M = v.shape[0]
    up = pltpu.roll(v, shift=1, axis=0) * not_top        # row above (dy=0 band)
    dn = pltpu.roll(v, shift=M - 1, axis=0) * not_bot    # row below (dy=2 band)
    lhs = jnp.concatenate([up, v, dn], axis=1).astype(jnp.bfloat16)
    out = jnp.dot(lhs, m_ref[...], preferred_element_type=jnp.float32)
    out = out + b_ref[...]                                # f32 bias add
    if relu:
        out = jnp.maximum(out, 0.0)
    return out


# -----------------------------------------------------------------------------
# Fused kernels: whole translator + detector (ir) / detector only (rgb),
# nb images (stacked along rows) per grid step, intermediates in registers.
# -----------------------------------------------------------------------------
def _make_ir_kernel(H, nb):
    M = nb * H

    def kernel(x_ref, m1, b1, m2, b2, m3, b3, m4, b4, o_ref):
        not_top, not_bot = _boundary_masks(M, H)
        x = x_ref[0]                                               # (M, W*Cin) f32
        h = _conv3x3(x, m1, b1, not_top, not_bot, relu=True)       # translator c1
        t = _conv3x3(h, m2, b2, not_top, not_bot, relu=False) + x  # c2 + residual
        d = _conv3x3(t, m3, b3, not_top, not_bot, relu=True)       # detector c1
        o_ref[0] = _conv3x3(d, m4, b4, not_top, not_bot, relu=False)

    return kernel


def _make_rgb_kernel(H, nb):
    M = nb * H

    def kernel(x_ref, m3, b3, m4, b4, o_ref):
        not_top, not_bot = _boundary_masks(M, H)
        d = _conv3x3(x_ref[0], m3, b3, not_top, not_bot, relu=True)
        o_ref[0] = _conv3x3(d, m4, b4, not_top, not_bot, relu=False)

    return kernel


def _fused_call(kernel, x_rows, mats, biases, out_width):
    steps, M, row_w = x_rows.shape
    in_specs = [pl.BlockSpec((1, M, row_w), lambda s: (s, 0, 0))]
    args = [x_rows]
    for m, b in zip(mats, biases):
        # Constant index maps -> weights/biases are fetched once and stay
        # resident.  TODO(synk): pipeline_mode=pl.Buffered(1) for big weights.
        in_specs.append(pl.BlockSpec(m.shape, lambda s: (0, 0)))
        in_specs.append(pl.BlockSpec(b.shape, lambda s: (0, 0)))
        args += [m, b]
    return pl.pallas_call(
        kernel,
        out_shape=jax.ShapeDtypeStruct((steps, M, out_width), jnp.float32),
        grid=(steps,),
        in_specs=in_specs,
        out_specs=pl.BlockSpec((1, M, out_width), lambda s: (s, 0, 0)),
        compiler_params=pltpu.CompilerParams(
            dimension_semantics=("parallel",)),
    )(*args)


# -----------------------------------------------------------------------------
# Synthetic parameters + packing.
# -----------------------------------------------------------------------------
def init_params(in_ch, hid_ch, det_ch, det_out, seed=0):
    key = jax.random.PRNGKey(seed)
    ks = jax.random.split(key, 8)
    scale = 0.1
    return {
        "tr_w1": scale * jax.random.normal(ks[0], (3, 3, in_ch, hid_ch), jnp.float32),
        "tr_b1": scale * jax.random.normal(ks[1], (hid_ch,), jnp.float32),
        "tr_w2": scale * jax.random.normal(ks[2], (3, 3, hid_ch, in_ch), jnp.float32),
        "tr_b2": scale * jax.random.normal(ks[3], (in_ch,), jnp.float32),
        "det_w1": scale * jax.random.normal(ks[4], (3, 3, in_ch, det_ch), jnp.float32),
        "det_b1": scale * jax.random.normal(ks[5], (det_ch,), jnp.float32),
        "det_w2": scale * jax.random.normal(ks[6], (3, 3, det_ch, det_out), jnp.float32),
        "det_b2": scale * jax.random.normal(ks[7], (det_out,), jnp.float32),
    }


def pack_params(params, W):
    return {
        "tr_m1": _band_matrices(params["tr_w1"], W),
        "tr_b1": _row_bias(params["tr_b1"], W),
        "tr_m2": _band_matrices(params["tr_w2"], W),
        "tr_b2": _row_bias(params["tr_b2"], W),
        "det_m1": _band_matrices(params["det_w1"], W),
        "det_b1": _row_bias(params["det_b1"], W),
        "det_m2": _band_matrices(params["det_w2"], W),
        "det_b2": _row_bias(params["det_b2"], W),
    }


def _images_per_step(N, H, target_rows=256):
    """Images stacked per grid step: fill the MXU M dimension (aim >= 128/256
    rows) while keeping >= 2 grid steps when the batch allows (v7x: 2 TCs)."""
    nb = max(1, min(N, target_rows // max(H, 1)))
    while nb > 1 and (N % nb != 0 or N // nb < 2):
        nb -= 1
    return nb


def modtr_forward(packed, x_nchw, modality="ir"):
    N, C, H, W = x_nchw.shape
    nb = _images_per_step(N, H)
    steps = N // nb
    # NCHW -> (steps, nb*H, W*C): nb images stacked along rows (sublanes),
    # lane index = x*C + c (dense spatial*channel lanes).
    x_rows = jnp.transpose(x_nchw, (0, 2, 3, 1)).reshape(steps, nb * H, W * C)
    if modality == "ir":
        mats = [packed["tr_m1"], packed["tr_m2"], packed["det_m1"], packed["det_m2"]]
        biases = [packed["tr_b1"], packed["tr_b2"], packed["det_b1"], packed["det_b2"]]
        kernel = _make_ir_kernel(H, nb)
    elif modality == "rgb":
        mats = [packed["det_m1"], packed["det_m2"]]
        biases = [packed["det_b1"], packed["det_b2"]]
        kernel = _make_rgb_kernel(H, nb)
    else:
        raise ValueError(f"unknown modality {modality!r}")
    out_w = mats[-1].shape[1]
    out_rows = _fused_call(kernel, x_rows, mats, biases, out_w)
    # TODO(synk): backward (train translator through frozen detector) would
    # need a custom VJP for the fused kernel; forward semantics only.
    out = out_rows.reshape(N, H, W, out_w // W)
    return jnp.transpose(out, (0, 3, 1, 2))                 # NHWC -> NCHW


# -----------------------------------------------------------------------------
# Plain-XLA f32 reference of the same synthetic nets (for a numerical check).
# -----------------------------------------------------------------------------
def _conv_ref(x, w, b):
    return jax.lax.conv_general_dilated(
        x, w, window_strides=(1, 1), padding=((1, 1), (1, 1)),
        dimension_numbers=("NHWC", "HWIO", "NHWC")) + b


def modtr_reference(params, x_nchw, modality="ir"):
    x = jnp.transpose(x_nchw, (0, 2, 3, 1))
    if modality == "ir":
        h = jnp.maximum(_conv_ref(x, params["tr_w1"], params["tr_b1"]), 0.0)
        x = _conv_ref(h, params["tr_w2"], params["tr_b2"]) + x
    h = jnp.maximum(_conv_ref(x, params["det_w1"], params["det_b1"]), 0.0)
    o = _conv_ref(h, params["det_w2"], params["det_b2"])
    return jnp.transpose(o, (0, 3, 1, 2))


# -----------------------------------------------------------------------------
if __name__ == "__main__":
    N, C, H, W = 4, 4, 16, 16      # small NCHW input, PyTorch convention
    HID, DET_CH, DET_OUT = 8, 8, 8

    params = init_params(in_ch=C, hid_ch=HID, det_ch=DET_CH, det_out=DET_OUT, seed=0)
    packed = pack_params(params, W)

    x = jax.random.normal(jax.random.PRNGKey(0), (N, C, H, W), jnp.float32)

    fwd_ir = jax.jit(functools.partial(modtr_forward, modality="ir"))
    out_ir = fwd_ir(packed, x)
    jax.block_until_ready(out_ir)
    assert out_ir.shape == (N, DET_OUT, H, W), out_ir.shape

    fwd_rgb = jax.jit(functools.partial(modtr_forward, modality="rgb"))
    out_rgb = fwd_rgb(packed, x)
    jax.block_until_ready(out_rgb)
    assert out_rgb.shape == (N, DET_OUT, H, W), out_rgb.shape

    # Numerical check vs the f32 XLA reference; kernel uses bf16 band matmuls
    # (f32 accumulation), so the tolerance is loosened accordingly.
    np.testing.assert_allclose(np.asarray(out_ir),
                               np.asarray(modtr_reference(params, x, "ir")),
                               rtol=3e-2, atol=3e-2)
    np.testing.assert_allclose(np.asarray(out_rgb),
                               np.asarray(modtr_reference(params, x, "rgb")),
                               rtol=3e-2, atol=3e-2)

    print("KERNEL_OK")
</pallas_src>

<mosaic_0001>
module attributes {stable_mosaic.version = 11 : i64} {
  func.func @kernel(%arg0: i32, %arg1: memref<1x32x64xf32, #tpu.memory_space<vmem>>, %arg2: memref<192x128xbf16, #tpu.memory_space<vmem>>, %arg3: memref<1x128xf32, #tpu.memory_space<vmem>>, %arg4: memref<384x64xbf16, #tpu.memory_space<vmem>>, %arg5: memref<1x64xf32, #tpu.memory_space<vmem>>, %arg6: memref<192x128xbf16, #tpu.memory_space<vmem>>, %arg7: memref<1x128xf32, #tpu.memory_space<vmem>>, %arg8: memref<384x128xbf16, #tpu.memory_space<vmem>>, %arg9: memref<1x128xf32, #tpu.memory_space<vmem>>, %arg10: memref<1x32x128xf32, #tpu.memory_space<vmem>>) attributes {dimension_semantics = [#tpu.dimension_semantics<parallel>], iteration_bounds = array<i64: 2>, scalar_prefetch = 0 : i64, scratch_operands = 0 : i64, tpu.core_type = #tpu.core_type<tc>, window_params = [{transform_indices = @transform_0, window_bounds = array<i64: 1, 32, 64>}, {pipeline_mode = #tpu.pipeline_mode<synchronous>, transform_indices = @transform_1, window_bounds = array<i64: 192, 128>}, {pipeline_mode = #tpu.pipeline_mode<synchronous>, transform_indices = @transform_2, window_bounds = array<i64: 1, 128>}, {pipeline_mode = #tpu.pipeline_mode<synchronous>, transform_indices = @transform_3, window_bounds = array<i64: 384, 64>}, {pipeline_mode = #tpu.pipeline_mode<synchronous>, transform_indices = @transform_4, window_bounds = array<i64: 1, 64>}, {pipeline_mode = #tpu.pipeline_mode<synchronous>, transform_indices = @transform_5, window_bounds = array<i64: 192, 128>}, {pipeline_mode = #tpu.pipeline_mode<synchronous>, transform_indices = @transform_6, window_bounds = array<i64: 1, 128>}, {pipeline_mode = #tpu.pipeline_mode<synchronous>, transform_indices = @transform_7, window_bounds = array<i64: 384, 128>}, {pipeline_mode = #tpu.pipeline_mode<synchronous>, transform_indices = @transform_8, window_bounds = array<i64: 1, 128>}, {transform_indices = @transform_9, window_bounds = array<i64: 1, 32, 128>}]} {
    %0 = tpu.iota {dimensions = array<i32: 0>} : vector<32x1xi32>
    %c16_i32 = arith.constant 16 : i32
    %c0_i32 = arith.constant 0 : i32
    %1 = arith.cmpi eq, %c16_i32, %c0_i32 : i32
    %c1_i32 = arith.constant 1 : i32
    %2 = arith.select %1, %c1_i32, %c16_i32 : i32
    %3 = vector.broadcast %2 : i32 to vector<32x1xi32>
    %4 = arith.remsi %0, %3 : vector<32x1xi32>
    %c0_i32_0 = arith.constant 0 : i32
    %5 = vector.broadcast %c0_i32_0 : i32 to vector<32x1xi32>
    %6 = arith.cmpi ne, %4, %5 : vector<32x1xi32>
    %c0_i32_1 = arith.constant 0 : i32
    %7 = vector.broadcast %c0_i32_1 : i32 to vector<32x1xi32>
    %8 = arith.cmpi slt, %4, %7 : vector<32x1xi32>
    %c0_i32_2 = arith.constant 0 : i32
    %9 = arith.cmpi slt, %2, %c0_i32_2 : i32
    %10 = vector.broadcast %9 : i1 to vector<32x1xi1>
    %11 = vector.broadcast %10 : vector<32x1xi1> to vector<32x1xi1>
    %12 = arith.xori %8, %11 : vector<32x1xi1>
    %13 = arith.andi %12, %6 : vector<32x1xi1>
    %14 = vector.broadcast %2 : i32 to vector<32x1xi32>
    %15 = arith.addi %4, %14 : vector<32x1xi32>
    %16 = arith.select %13, %15, %4 : vector<32x1xi1>, vector<32x1xi32>
    %c0_i32_3 = arith.constant 0 : i32
    %17 = vector.broadcast %c0_i32_3 : i32 to vector<32x1xi32>
    %18 = arith.cmpi ne, %16, %17 : vector<32x1xi32>
    %19 = arith.extui %18 : vector<32x1xi1> to vector<32x1xi32>
    %20 = arith.sitofp %19 : vector<32x1xi32> to vector<32x1xf32>
    %c15_i32 = arith.constant 15 : i32
    %21 = vector.broadcast %c15_i32 : i32 to vector<32x1xi32>
    %22 = arith.cmpi ne, %16, %21 : vector<32x1xi32>
    %23 = arith.extui %22 : vector<32x1xi1> to vector<32x1xi32>
    %24 = arith.sitofp %23 : vector<32x1xi32> to vector<32x1xf32>
    %c0 = arith.constant 0 : index
    %c0_4 = arith.constant 0 : index
    %c0_5 = arith.constant 0 : index
    %25 = vector.load %arg1[%c0, %c0_4, %c0_5] : memref<1x32x64xf32, #tpu.memory_space<vmem>>, vector<1x32x64xf32>
    %26 = vector.shape_cast %25 : vector<1x32x64xf32> to vector<32x64xf32>
    %c1_i32_6 = arith.constant 1 : i32
    %27 = tpu.dynamic_rotate %26 by %c1_i32_6 dim 0 : vector<32x64xf32>, i32 -> vector<32x64xf32>
    %28 = vector.broadcast %20 : vector<32x1xf32> to vector<32x64xf32>
    %29 = arith.mulf %27, %28 : vector<32x64xf32>
    %c31_i32 = arith.constant 31 : i32
    %30 = tpu.dynamic_rotate %26 by %c31_i32 dim 0 : vector<32x64xf32>, i32 -> vector<32x64xf32>
    %31 = vector.broadcast %24 : vector<32x1xf32> to vector<32x64xf32>
    %32 = arith.mulf %30, %31 : vector<32x64xf32>
    %33 = tpu.concatenate %29, %26, %32 in 1 : vector<32x64xf32>, vector<32x64xf32>, vector<32x64xf32> -> vector<32x192xf32>
    %34 = arith.truncf %33 : vector<32x192xf32> to vector<32x192xbf16>
    %c0_7 = arith.constant 0 : index
    %c0_8 = arith.constant 0 : index
    %35 = vector.load %arg2[%c0_7, %c0_8] : memref<192x128xbf16, #tpu.memory_space<vmem>>, vector<192x128xbf16>
    %cst = arith.constant dense<0.000000e+00> : vector<32x128xf32>
    %36 = tpu.matmul %34, %35, %cst {dimension_numbers = #tpu.dot_dimension_numbers<[1], [0], [0], [1], [0, 0, 1, 1], [], []>} : vector<32x192xbf16>, vector<192x128xbf16>, vector<32x128xf32> -> vector<32x128xf32>
    %c0_9 = arith.constant 0 : index
    %c0_10 = arith.constant 0 : index
    %37 = vector.load %arg3[%c0_9, %c0_10] : memref<1x128xf32, #tpu.memory_space<vmem>>, vector<1x128xf32>
    %38 = vector.broadcast %37 : vector<1x128xf32> to vector<32x128xf32>
    %39 = arith.addf %36, %38 : vector<32x128xf32>
    %cst_11 = arith.constant 0.000000e+00 : f32
    %40 = vector.broadcast %cst_11 : f32 to vector<32x128xf32>
    %41 = arith.maximumf %39, %40 : vector<32x128xf32>
    %c1_i32_12 = arith.constant 1 : i32
    %42 = tpu.dynamic_rotate %41 by %c1_i32_12 dim 0 : vector<32x128xf32>, i32 -> vector<32x128xf32>
    %43 = vector.broadcast %20 : vector<32x1xf32> to vector<32x128xf32>
    %44 = arith.mulf %42, %43 : vector<32x128xf32>
    %c31_i32_13 = arith.constant 31 : i32
    %45 = tpu.dynamic_rotate %41 by %c31_i32_13 dim 0 : vector<32x128xf32>, i32 -> vector<32x128xf32>
    %46 = vector.broadcast %24 : vector<32x1xf32> to vector<32x128xf32>
    %47 = arith.mulf %45, %46 : vector<32x128xf32>
    %48 = tpu.concatenate %44, %41, %47 in 1 : vector<32x128xf32>, vector<32x128xf32>, vector<32x128xf32> -> vector<32x384xf32>
    %49 = arith.truncf %48 : vector<32x384xf32> to vector<32x384xbf16>
    %c0_14 = arith.constant 0 : index
    %c0_15 = arith.constant 0 : index
    %50 = vector.load %arg4[%c0_14, %c0_15] : memref<384x64xbf16, #tpu.memory_space<vmem>>, vector<384x64xbf16>
    %cst_16 = arith.constant dense<0.000000e+00> : vector<32x64xf32>
    %51 = tpu.matmul %49, %50, %cst_16 {dimension_numbers = #tpu.dot_dimension_numbers<[1], [0], [0], [1], [0, 0, 1, 1], [], []>} : vector<32x384xbf16>, vector<384x64xbf16>, vector<32x64xf32> -> vector<32x64xf32>
    %c0_17 = arith.constant 0 : index
    %c0_18 = arith.constant 0 : index
    %52 = vector.load %arg5[%c0_17, %c0_18] : memref<1x64xf32, #tpu.memory_space<vmem>>, vector<1x64xf32>
    %53 = vector.broadcast %52 : vector<1x64xf32> to vector<32x64xf32>
    %54 = arith.addf %51, %53 : vector<32x64xf32>
    %55 = arith.addf %54, %26 : vector<32x64xf32>
    %c1_i32_19 = arith.constant 1 : i32
    %56 = tpu.dynamic_rotate %55 by %c1_i32_19 dim 0 : vector<32x64xf32>, i32 -> vector<32x64xf32>
    %57 = vector.broadcast %20 : vector<32x1xf32> to vector<32x64xf32>
    %58 = arith.mulf %56, %57 : vector<32x64xf32>
    %c31_i32_20 = arith.constant 31 : i32
    %59 = tpu.dynamic_rotate %55 by %c31_i32_20 dim 0 : vector<32x64xf32>, i32 -> vector<32x64xf32>
    %60 = vector.broadcast %24 : vector<32x1xf32> to vector<32x64xf32>
    %61 = arith.mulf %59, %60 : vector<32x64xf32>
    %62 = tpu.concatenate %58, %55, %61 in 1 : vector<32x64xf32>, vector<32x64xf32>, vector<32x64xf32> -> vector<32x192xf32>
    %63 = arith.truncf %62 : vector<32x192xf32> to vector<32x192xbf16>
    %c0_21 = arith.constant 0 : index
    %c0_22 = arith.constant 0 : index
    %64 = vector.load %arg6[%c0_21, %c0_22] : memref<192x128xbf16, #tpu.memory_space<vmem>>, vector<192x128xbf16>
    %cst_23 = arith.constant dense<0.000000e+00> : vector<32x128xf32>
    %65 = tpu.matmul %63, %64, %cst_23 {dimension_numbers = #tpu.dot_dimension_numbers<[1], [0], [0], [1], [0, 0, 1, 1], [], []>} : vector<32x192xbf16>, vector<192x128xbf16>, vector<32x128xf32> -> vector<32x128xf32>
    %c0_24 = arith.constant 0 : index
    %c0_25 = arith.constant 0 : index
    %66 = vector.load %arg7[%c0_24, %c0_25] : memref<1x128xf32, #tpu.memory_space<vmem>>, vector<1x128xf32>
    %67 = vector.broadcast %66 : vector<1x128xf32> to vector<32x128xf32>
    %68 = arith.addf %65, %67 : vector<32x128xf32>
    %cst_26 = arith.constant 0.000000e+00 : f32
    %69 = vector.broadcast %cst_26 : f32 to vector<32x128xf32>
    %70 = arith.maximumf %68, %69 : vector<32x128xf32>
    %c1_i32_27 = arith.constant 1 : i32
    %71 = tpu.dynamic_rotate %70 by %c1_i32_27 dim 0 : vector<32x128xf32>, i32 -> vector<32x128xf32>
    %72 = vector.broadcast %20 : vector<32x1xf32> to vector<32x128xf32>
    %73 = arith.mulf %71, %72 : vector<32x128xf32>
    %c31_i32_28 = arith.constant 31 : i32
    %74 = tpu.dynamic_rotate %70 by %c31_i32_28 dim 0 : vector<32x128xf32>, i32 -> vector<32x128xf32>
    %75 = vector.broadcast %24 : vector<32x1xf32> to vector<32x128xf32>
    %76 = arith.mulf %74, %75 : vector<32x128xf32>
    %77 = tpu.concatenate %73, %70, %76 in 1 : vector<32x128xf32>, vector<32x128xf32>, vector<32x128xf32> -> vector<32x384xf32>
    %78 = arith.truncf %77 : vector<32x384xf32> to vector<32x384xbf16>
    %c0_29 = arith.constant 0 : index
    %c0_30 = arith.constant 0 : index
    %79 = vector.load %arg8[%c0_29, %c0_30] : memref<384x128xbf16, #tpu.memory_space<vmem>>, vector<384x128xbf16>
    %cst_31 = arith.constant dense<0.000000e+00> : vector<32x128xf32>
    %80 = tpu.matmul %78, %79, %cst_31 {dimension_numbers = #tpu.dot_dimension_numbers<[1], [0], [0], [1], [0, 0, 1, 1], [], []>} : vector<32x384xbf16>, vector<384x128xbf16>, vector<32x128xf32> -> vector<32x128xf32>
    %c0_32 = arith.constant 0 : index
    %c0_33 = arith.constant 0 : index
    %81 = vector.load %arg9[%c0_32, %c0_33] : memref<1x128xf32, #tpu.memory_space<vmem>>, vector<1x128xf32>
    %82 = vector.broadcast %81 : vector<1x128xf32> to vector<32x128xf32>
    %83 = arith.addf %80, %82 : vector<32x128xf32>
    %c0_34 = arith.constant 0 : index
    %c0_35 = arith.constant 0 : index
    %c0_36 = arith.constant 0 : index
    %84 = vector.load %arg10[%c0_34, %c0_35, %c0_36] : memref<1x32x128xf32, #tpu.memory_space<vmem>>, vector<1x32x128xf32>
    %85 = vector.shape_cast %84 : vector<1x32x128xf32> to vector<32x128xf32>
    %86 = vector.shape_cast %83 : vector<32x128xf32> to vector<1x32x128xf32>
    tpu.vector_store %arg10[%c0_34, %c0_35, %c0_36], %86 {strides = array<i32>} : memref<1x32x128xf32, #tpu.memory_space<vmem>>, vector<1x32x128xf32>,
    return
  }
  func.func @transform_0(%arg0: i32) -> (i32, i32, i32) {
    %c0_i32 = arith.constant 0 : i32
    %c0_i32_0 = arith.constant 0 : i32
    %c0_i32_1 = arith.constant 0 : i32
    return %arg0, %c0_i32, %c0_i32_0 : i32, i32, i32
  }
  func.func @transform_1(%arg0: i32) -> (i32, i32) {
    %c0_i32 = arith.constant 0 : i32
    %c0_i32_0 = arith.constant 0 : i32
    %c0_i32_1 = arith.constant 0 : i32
    return %c0_i32, %c0_i32_0 : i32, i32
  }
  func.func @transform_2(%arg0: i32) -> (i32, i32) {
    %c0_i32 = arith.constant 0 : i32
    %c0_i32_0 = arith.constant 0 : i32
    %c0_i32_1 = arith.constant 0 : i32
    return %c0_i32, %c0_i32_0 : i32, i32
  }
  func.func @transform_3(%arg0: i32) -> (i32, i32) {
    %c0_i32 = arith.constant 0 : i32
    %c0_i32_0 = arith.constant 0 : i32
    %c0_i32_1 = arith.constant 0 : i32
    return %c0_i32, %c0_i32_0 : i32, i32
  }
  func.func @transform_4(%arg0: i32) -> (i32, i32) {
    %c0_i32 = arith.constant 0 : i32
    %c0_i32_0 = arith.constant 0 : i32
    %c0_i32_1 = arith.constant 0 : i32
    return %c0_i32, %c0_i32_0 : i32, i32
  }
  func.func @transform_5(%arg0: i32) -> (i32, i32) {
    %c0_i32 = arith.constant 0 : i32
    %c0_i32_0 = arith.constant 0 : i32
    %c0_i32_1 = arith.constant 0 : i32
    return %c0_i32, %c0_i32_0 : i32, i32
  }
  func.func @transform_6(%arg0: i32) -> (i32, i32) {
    %c0_i32 = arith.constant 0 : i32
    %c0_i32_0 = arith.constant 0 : i32
    %c0_i32_1 = arith.constant 0 : i32
    return %c0_i32, %c0_i32_0 : i32, i32
  }
  func.func @transform_7(%arg0: i32) -> (i32, i32) {
    %c0_i32 = arith.constant 0 : i32
    %c0_i32_0 = arith.constant 0 : i32
    %c0_i32_1 = arith.constant 0 : i32
    return %c0_i32, %c0_i32_0 : i32, i32
  }
  func.func @transform_8(%arg0: i32) -> (i32, i32) {
    %c0_i32 = arith.constant 0 : i32
    %c0_i32_0 = arith.constant 0 : i32
    %c0_i32_1 = arith.constant 0 : i32
    return %c0_i32, %c0_i32_0 : i32, i32
  }
  func.func @transform_9(%arg0: i32) -> (i32, i32, i32) {
    %c0_i32 = arith.constant 0 : i32
    %c0_i32_0 = arith.constant 0 : i32
    %c0_i32_1 = arith.constant 0 : i32
    return %arg0, %c0_i32, %c0_i32_0 : i32, i32, i32
  }
}

</mosaic_0001>

<bundles_post_ra>
// kernel: modtr_forward.1
= control target key start
LH: loop header
LB: loop body
LE: loop exit
PB: predicated region body
PF: predicated region fallthrough
CT: control target
= control target key end

     0   :  { %s1922_s30 = smov 0   ;;  %s2310_s0 = inlined_call_operand.vmem [shape: f32[2,32,64], index: 0, kind: input, shape index: {}]   ;;  %s2311_s1 = inlined_call_operand.vmem [shape: bf16[192,128], index: 1, kind: input, shape index: {}]   ;;  %s2312_s2 = inlined_call_operand.vmem [shape: f32[1,128], index: 2, kind: input, shape index: {}]   ;;  %s2313_s3 = inlined_call_operand.vmem [shape: bf16[384,64], index: 3, kind: input, shape index: {}]   ;;  %s2314_s4 = inlined_call_operand.vmem [shape: f32[1,64], index: 4, kind: input, shape index: {}]   ;;  %s2315_s5 = inlined_call_operand.vmem [shape: bf16[192,128], index: 5, kind: input, shape index: {}]   ;;  %s2316_s6 = inlined_call_operand.vmem [shape: f32[1,128], index: 6, kind: input, shape index: {}]   ;;  %s2317_s7 = inlined_call_operand.vmem [shape: bf16[384,128], index: 7, kind: input, shape index: {}]   ;;  %s2318_s8 = inlined_call_operand.vmem [shape: f32[1,128], index: 8, kind: input, shape index: {}]   ;;  %s2319_s9 = inlined_call_operand.vmem [shape: f32[2,32,128], index: 9, kind: output, shape index: {}]  }
   0x1 LB: > { %s1439_s10 = sadd.s32 4294967295, %s1868_s30   ;;  %p1443_p0 = scmp.ge.s32.totalorder %s1868_s30, 1  ;;  %s1868_s30 = sphi %s1922_s30, %s19_s30  }
   0x2   : > { %p287_p1 = scmp.lt.s32.totalorder %s1868_s30, 3 }
   0x4   : > { %p288_p2 = pnand %p1443_p0, %p287_p1 }
   0x5   : > { %p323_p3 = scmp.lt.s32.totalorder (!%p288_p2), %s1439_s10, 1  ;;  %s1870_s27 = smov (!%p288_p2), 64  }
   0x6   : > { %291 = sbr.rel (%p288_p2) target bundleno = 896 (0x380), region = 56 }
   0xb   : > { %v1755_v0 = vld [vmem:[%s2311_s1 + $0x38] sm:$0xff]  ;;  %s2321_s10 = smov (!%p323_p3, %s1439_s10), 1  ;;  %v1754_v2 = vld [vmem:[%s2311_s1 + $0x30] sm:$0xff]  ;;  %v1753_v6 = vld [vmem:[%s2311_s1 + $0x28] sm:$0xff]  ;;  %v334_v17 = vlaneseq  ;;  %v1871_v23 = vmov 0.0   ;;  %vm457_vm2 = vcmask 523264  }
   0xc   : > { %v1759_v1 = vld [vmem:[%s2311_s1 + $0x58] sm:$0xff]  ;;  %572 = vmatpush.bf16.msra.mxu0 %v1755_v0  ;;  %v1758_v3 = vld [vmem:[%s2311_s1 + $0x50] sm:$0xff]  ;;  %s1746_s19 = sshll.u32 %s2321_s10, 5  ;;  %v1757_v8 = vld [vmem:[%s2311_s1 + $0x48] sm:$0xff] }
   0xd   : > { %595 = vmatpush.bf16.msra.mxu1 %v1759_v1  ;;  %s327_s22 = scalar_lea.vmem %s2310_s0, %s1746_s19  ;;  %v1752_v11 = vld [vmem:[%s2311_s1 + $0x20] sm:$0xff]  ;;  %v1751_v14 = vld [vmem:[%s2311_s1 + $0x18] sm:$0xff]  ;;  %v1750_v15 = vld [vmem:[%s2311_s1 + $0x10] sm:$0xff]  ;;  %v1985_v18 = vshrl.u32 %v334_v17, 7  ;;  %s332_s11 = scalar_lea.vmem %s2319_s9, %s1746_s19 }
   0xe   : > { %v1950_v4 = vld [vmem:[%s327_s22] sm:$0xff]  ;;  %v1952_v5 = vld [vmem:[%s327_s22 + $0x8] sm:$0xff]  ;;  %v1963_v9 = vld [vmem:[%s327_s22 + $0x10] sm:$0xff] }
   0xf   : > { %v1838_v7 = vpack.i.bf16 %v1952_v5, %v1950_v4  ;;  %v1965_v10 = vld [vmem:[%s327_s22 + $0x18] sm:$0xff]  ;;  %v1756_v12 = vld [vmem:[%s2311_s1 + $0x40] sm:$0xff]  ;;  %v1749_v16 = vld [vmem:[%s2311_s1 + $0x8] sm:$0xff]  ;;  %v336_v19 = vadd.s32 8, %v1985_v18  ;;  %v429_v21 = vrot.slane %v1952_v5, 1  ;;  %v430_v22 = vrot.slane %v1963_v9, 1 }
  0x10   : > { %573 = vmatpush.bf16.msra.mxu0 %v1754_v2  ;;  %v1843_v13 = vpack.i.bf16 %v1965_v10, %v1963_v9  ;;  %vm432_vm1 = vcmp.lt.s32.totalorder %v1985_v18, 7  ;;  %v428_v25 = vrot.slane %v1950_v4, 1  ;;  %v1748_v30 = vld [vmem:[%s2311_s1] sm:$0xff]  ;;  %v338_v31 = vadd.s32 24, %v1985_v18  ;;  %v1775_v40 = vld [vmem:[%s2313_s3 + $0x78] sm:$0xff]  ;;  %v1774_v43 = vld [vmem:[%s2313_s3 + $0x70] sm:$0xff] }
  0x11   : > { %596 = vmatpush.bf16.msra.mxu1 %v1758_v3  ;;  %1839 = vrot.lane.b32.xlu0 %v1838_v7, %s1870_s27  ;;  %v350_v20 = vand.u32 15, %v336_v19  ;;  %v434_v26 = vsel %vm432_vm1, %v429_v21, %v430_v22  ;;  %v431_v33 = vrot.slane %v1965_v10, 1  ;;  %v343_v39 = vand.u32 15, %v1985_v18  ;;  %v1783_v7 = vld [vmem:[%s2313_s3 + $0xb8] sm:$0xff]  ;;  %v1766_v17 = vld [vmem:[%s2313_s3 + $0x30] sm:$0xff]  ;;  %v1780_v19 = vld [vmem:[%s2313_s3 + $0xa0] sm:$0xff] }
  0x12   : > { %v435_v28 = vsel %vm432_vm1, %v428_v25, %v429_v21  ;;  %v364_v32 = vand.u32 15, %v338_v31  ;;  %v418_v41 = vrot.slane %v1965_v10, 7  ;;  %v415_v42 = vrot.slane %v1950_v4, 7  ;;  %859 = vmatpush.bf16.msra.mxu3 %v1775_v40  ;;  %v1765_v21 = vld [vmem:[%s2313_s3 + $0x28] sm:$0xff] }
  0x13   : > { %vm400_vm0 = vcmp.ne.s32.totalorder %v350_v20, 15  ;;  %v433_v35 = vsel %vm432_vm1, %v430_v22, %v431_v33  ;;  %v436_v36 = vsel %vm432_vm1, %v431_v33, %v428_v25  ;;  %vm419_vm4 = vcmp.lt.s32.totalorder %v1985_v18, 1  ;;  %v1768_v20 = vld [vmem:[%s2313_s3 + $0x40] sm:$0xff]  ;;  %v1779_v22 = vld [vmem:[%s2313_s3 + $0x98] sm:$0xff]  ;;  %v1778_v25 = vld [vmem:[%s2313_s3 + $0x90] sm:$0xff] }
  0x14   : > { %574 = vmatpush.bf16.msra.mxu0 %v1753_v6  ;;  %v1991_v24 = vsel %vm400_vm0, 1.0, %v1871_v23  ;;  %vm402_vm3 = vcmp.ne.s32.totalorder %v364_v32, 15  ;;  %vm387_vm5 = vcmp.ne.s32.totalorder %v343_v39, 0  ;;  %v416_v45 = vrot.slane %v1952_v5, 7  ;;  %v1773_v6 = vld [vmem:[%s2313_s3 + $0x68] sm:$0xff] }
  0x15   : > { %597 = vmatpush.bf16.msra.mxu1 %v1757_v8  ;;  %v438_v27 = vmul.f32 %v1991_v24, %v434_v26  ;;  %v2005_v34 = vsel %vm402_vm3, 1.0, %v1871_v23  ;;  %v2023_v44 = vsel %vm387_vm5, 1.0, %v1871_v23  ;;  %v423_v46 = vsel %vm419_vm4, %v418_v41, %v415_v42  ;;  %v1772_v8 = vld [vmem:[%s2313_s3 + $0x60] sm:$0xff]  ;;  %v1763_v26 = vld [vmem:[%s2313_s3 + $0x18] sm:$0xff]  ;;  %v1761_v31 = vld [vmem:[%s2313_s3 + $0x8] sm:$0xff] }
  0x16   : > { %v440_v37 = vmul.f32 %v2005_v34, %v436_v36  ;;  %860 = vmatpush.bf16.msra.mxu3 %v1774_v43  ;;  %v337_v47 = vadd.s32 16, %v1985_v18  ;;  %v424_v48 = vmul.f32 %v2023_v44, %v423_v46  ;;  %v422_v50 = vsel %vm419_vm4, %v415_v42, %v416_v45  ;;  %v1858_v33 = vld [vmem:[%s2312_s2] ss:$0 sm:$0xff] }
  0x17   : > { %v463_v29 = vpack.c.bf16 %v438_v27, %v435_v28  ;;  %v417_v57 = vrot.slane %v1963_v9, 7  ;;  %v1777_v27 = vld [vmem:[%s2313_s3 + $0x88] sm:$0xff]  ;;  %v1762_v28 = vld [vmem:[%s2313_s3 + $0x10] sm:$0xff] }
  0x18   : > { %575 = vmatpush.bf16.msra.mxu0 %v1752_v11  ;;  %v465_v38 = vpack.c.bf16 %v440_v37, %v433_v35  ;;  %v357_v53 = vand.u32 15, %v337_v47  ;;  %v1771_v11 = vld [vmem:[%s2313_s3 + $0x58] sm:$0xff]  ;;  %v1760_v35 = vld [vmem:[%s2313_s3] sm:$0xff] }
  0x19   : > { %598 = vmatpush.bf16.msra.mxu1 %v1756_v12  ;;  %1844 = vrot.lane.b32.xlu0 %v1843_v13, %s1870_s27  ;;  %v421_v60 = vsel %vm419_vm4, %v416_v45, %v417_v57  ;;  %v420_v0 = vsel %vm419_vm4, %v417_v57, %v418_v41  ;;  %v1782_v12 = vld [vmem:[%s2313_s3 + $0xb0] sm:$0xff] }
  0x1a   : > { %vm389_vm6 = vcmp.ne.s32.totalorder %v357_v53, 0  ;;  %861 = vmatpush.bf16.msra.mxu3 %v1773_v6  ;;  %v1770_v13 = vld [vmem:[%s2313_s3 + $0x50] sm:$0xff] }
  0x1b   : > { %v2035_v59 = vsel %vm389_vm6, 1.0, %v1871_v23  ;;  %v1764_v23 = vld [vmem:[%s2313_s3 + $0x20] sm:$0xff] }
  0x1c   : > { %576 = vmatpush.bf16.msra.mxu0 %v1751_v14  ;;  %1500 = vmatmul.msk.bf16.vlgmr.msra.gmra.mxu1 %vm457_vm2, %v463_v29  ;;  %v426_v63 = vmul.f32 %v2035_v59, %v421_v60  ;;  %v1767_v14 = vld [vmem:[%s2313_s3 + $0x38] sm:$0xff]  ;;  %v1776_v29 = vld [vmem:[%s2313_s3 + $0x80] sm:$0xff] }
  0x1d   : > { %878 = vmatpush.bf16.msrb.mxu1 %v1783_v7  ;;  %840 = vmatpush.bf16.msra.mxu2 %v1767_v14 }
  0x1e   : > { %862 = vmatpush.bf16.msra.mxu3 %v1772_v8 }
  0x20   : > { %577 = vmatpush.bf16.msra.mxu0 %v1750_v15  ;;  %v1781_v15 = vld [vmem:[%s2313_s3 + $0xa8] sm:$0xff] }
  0x21   : > { %879 = vmatpush.bf16.msrb.mxu1 %v1782_v12  ;;  %841 = vmatpush.bf16.msra.mxu2 %v1766_v17 }
  0x22   : > { %863 = vmatpush.bf16.msra.mxu3 %v1771_v11 }
  0x24   : > { %578 = vmatpush.bf16.msra.mxu0 %v1749_v16  ;;  %v1769_v16 = vld [vmem:[%s2313_s3 + $0x48] sm:$0xff] }
  0x25   : > { %880 = vmatpush.bf16.msrb.mxu1 %v1781_v15  ;;  %842 = vmatpush.bf16.msra.mxu2 %v1765_v21 }
  0x26   : > { %864 = vmatpush.bf16.msra.mxu3 %v1770_v13 }
  0x28   : > { %579 = vmatpush.bf16.msra.mxu0 %v1748_v30 }
  0x29   : > { %881 = vmatpush.bf16.msrb.mxu1 %v1780_v19  ;;  %843 = vmatpush.bf16.msra.mxu2 %v1764_v23  ;;  %v1795_v23 = vld [vmem:[%s2315_s5 + $0x58] sm:$0xff] }
  0x2a   : > { %865 = vmatpush.bf16.msra.mxu3 %v1769_v16 }
  0x2c   : > { %1501 = vmatmul.msk.bf16.gmra.mxu1 %vm457_vm2, %v465_v38 }
  0x2d   : > { %882 = vmatpush.bf16.msrb.mxu1 %v1779_v22  ;;  %844 = vmatpush.bf16.msra.mxu2 %v1763_v26  ;;  %v1793_v26 = vld [vmem:[%s2315_s5 + $0x48] sm:$0xff] }
  0x2e   : > { %866 = vmatpush.bf16.msra.mxu3 %v1768_v20 }
  0x31   : > { %883 = vmatpush.bf16.msrb.mxu1 %v1778_v25  ;;  %845 = vmatpush.bf16.msra.mxu2 %v1762_v28  ;;  %v1794_v25 = vld [vmem:[%s2315_s5 + $0x50] sm:$0xff] }
  0x35   : > { %884 = vmatpush.bf16.msrb.mxu1 %v1777_v27  ;;  %846 = vmatpush.bf16.msra.mxu2 %v1761_v31  ;;  %v1792_v27 = vld [vmem:[%s2315_s5 + $0x40] sm:$0xff] }
  0x39   : > { %885 = vmatpush.bf16.msrb.mxu1 %v1776_v29  ;;  %847 = vmatpush.bf16.msra.mxu2 %v1760_v35  ;;  %v1859_v29 = vld [vmem:[%s2314_s4] ss:$0 sm:$0xff] }
  0x3d   : > { %1078 = vmatpush.bf16.msrb.mxu2 %v1795_v23 }
  0x41   : > { %1079 = vmatpush.bf16.msrb.mxu2 %v1794_v25 }
  0x45   : > { %1080 = vmatpush.bf16.msrb.mxu2 %v1793_v26 }
  0x49   : > { %1081 = vmatpush.bf16.msrb.mxu2 %v1792_v27  ;;  %v1784_v27 = vld [vmem:[%s2315_s5] sm:$0xff] }
  0x83   : > { %v1840_v49 = vpop.permute.xlu0 %1839 }
  0x84   : > { %v1842_v51 = vunpack.i.h.bf16 %v1840_v49  ;;  %v1841_v52 = vunpack.i.l.bf16 %v1840_v49 }
  0x86   : > { %v458_v54 = vsel %vm457_vm2, %v424_v48, %v1841_v52  ;;  %v459_v55 = vsel %vm457_vm2, %v422_v50, %v1842_v51 }
  0x87   : > { %v462_v56 = vpack.c.bf16 %v459_v55, %v458_v54 }
  0x89   : > { %580 = vmatmul.bf16.vlgmr.msra.gmra.mxu0 %v462_v56 }
  0x8b   : > { %v1845_v58 = vpop.permute.xlu0 %1844 }
  0x8c   : > { %v1847_v61 = vunpack.i.h.bf16 %v1845_v58  ;;  %v1846_v62 = vunpack.i.l.bf16 %v1845_v58 }
  0x8e   : > { %v460_v1 = vsel %vm457_vm2, %v426_v63, %v1846_v62  ;;  %v461_v2 = vsel %vm457_vm2, %v420_v0, %v1847_v61 }
  0x8f   : > { %v464_v3 = vpack.c.bf16 %v461_v2, %v460_v1 }
  0x99   : > { %585 = vmatmul.bf16.gmra.mxu0 %v464_v3  ;;  %v600_v30 = vpop.f32.mrf.mxu1 }
  0xa1   : > { %v602_v37 = vpop.f32.mrf.mxu1 }
  0xa9   : > { %v605_v46 = vpop.f32.mrf.mxu1 }
  0xb1   : > { %v607_v57 = vpop.f32.mrf.mxu1 }
 0x106   : > { %v581_v32 = vpop.f32.mrf.mxu0 }
 0x107   : > { %v582_v36 = vadd.f32 %v1858_v33, %v581_v32 }
 0x109   : > { %v601_v39 = vadd.f32 %v600_v30, %v582_v36 }
 0x10b   : > { %v610_v42 = vmax.f32 %v601_v39, 0.0 }
 0x10d   : > { %v626_v54 = vrot.slane %v610_v42, 1  ;;  %v614_v2 = vrot.slane %v610_v42, 7 }
 0x10e   : > { %v583_v38 = vpop.f32.mrf.mxu0 }
 0x10f   : > { %v584_v40 = vadd.f32 %v1858_v33, %v583_v38 }
 0x111   : > { %v603_v41 = vadd.f32 %v602_v37, %v584_v40 }
 0x113   : > { %v611_v43 = vmax.f32 %v603_v41, 0.0 }
 0x115   : > { %v639_v45 = vpack.c.bf16 %v611_v43, %v610_v42  ;;  %v627_v51 = vrot.slane %v611_v43, 1  ;;  %v615_v3 = vrot.slane %v611_v43, 7 }
 0x116   : > { %v586_v47 = vpop.f32.mrf.mxu0 }
 0x117   : > { %v587_v48 = vadd.f32 %v1858_v33, %v586_v47  ;;  %867 = vmatmul.bf16.vlgmr.msra.gmra.mxu3 %v639_v45  ;;  %v632_v61 = vsel %vm432_vm1, %v626_v54, %v627_v51  ;;  %v620_v11 = vsel %vm419_vm4, %v614_v2, %v615_v3  ;;  %v1791_v47 = vld [vmem:[%s2315_s5 + $0x38] sm:$0xff] }
 0x118   : > { %1055 = vmatpush.bf16.msrb.mxu0 %v1791_v47  ;;  %v1809_v47 = vld [vmem:[%s2317_s7 + $0x68] sm:$0xff] }
 0x119   : > { %v606_v49 = vadd.f32 %v605_v46, %v587_v48 }
 0x11b   : > { %v612_v50 = vmax.f32 %v606_v49, 0.0 }
 0x11d   : > { %v628_v52 = vrot.slane %v612_v50, 1  ;;  %v616_v16 = vrot.slane %v612_v50, 7 }
 0x11e   : > { %v588_v53 = vpop.f32.mrf.mxu0 }
 0x11f   : > { %v589_v55 = vadd.f32 %v1858_v33, %v588_v53  ;;  %v631_v56 = vsel %vm432_vm1, %v627_v51, %v628_v52  ;;  %v619_v19 = vsel %vm419_vm4, %v615_v3, %v616_v16  ;;  %v1790_v53 = vld [vmem:[%s2315_s5 + $0x30] sm:$0xff] }
 0x120   : > { %v635_v58 = vmul.f32 %v1991_v24, %v631_v56  ;;  %v624_v21 = vmul.f32 %v2035_v59, %v619_v19  ;;  %1056 = vmatpush.bf16.msrb.mxu0 %v1790_v53  ;;  %v1817_v53 = vld [vmem:[%s2317_s7 + $0xa8] sm:$0xff] }
 0x121   : > { %v608_v60 = vadd.f32 %v607_v57, %v589_v55  ;;  %v1789_v55 = vld [vmem:[%s2315_s5 + $0x28] sm:$0xff] }
 0x122   : > { %v640_v62 = vpack.c.bf16 %v635_v58, %v632_v61 }
 0x123   : > { %v613_v63 = vmax.f32 %v608_v60, 0.0 }
 0x124   : > { %886 = vmatmul.bf16.vlgmr.msrb.gmra.mxu1 %v640_v62  ;;  %1057 = vmatpush.bf16.msrb.mxu0 %v1789_v55  ;;  %v1804_v55 = vld [vmem:[%s2317_s7 + $0x40] sm:$0xff] }
 0x125   : > { %v617_v0 = vrot.slane %v613_v63, 7  ;;  %v642_v1 = vpack.c.bf16 %v613_v63, %v612_v50  ;;  %v629_v7 = vrot.slane %v613_v63, 1 }
 0x127   : > { %872 = vmatmul.bf16.gmra.mxu3 %v642_v1  ;;  %v621_v6 = vsel %vm419_vm4, %v617_v0, %v614_v2  ;;  %v633_v13 = vsel %vm432_vm1, %v629_v7, %v626_v54  ;;  %v630_v15 = vsel %vm432_vm1, %v628_v52, %v629_v7  ;;  %v618_v20 = vsel %vm419_vm4, %v616_v16, %v617_v0  ;;  %v1788_v0 = vld [vmem:[%s2315_s5 + $0x20] sm:$0xff] }
 0x128   : > { %v622_v8 = vmul.f32 %v2023_v44, %v621_v6  ;;  %v637_v14 = vmul.f32 %v2005_v34, %v633_v13  ;;  %v641_v22 = vpack.c.bf16 %v618_v20, %v624_v21  ;;  %1058 = vmatpush.bf16.msrb.mxu0 %v1788_v0  ;;  %v1787_v13 = vld [vmem:[%s2315_s5 + $0x18] sm:$0xff]  ;;  %v1812_v0 = vld [vmem:[%s2317_s7 + $0x80] sm:$0xff] }
 0x12a   : > { %v638_v12 = vpack.c.bf16 %v620_v11, %v622_v8  ;;  %v643_v17 = vpack.c.bf16 %v637_v14, %v630_v15 }
 0x12c   : > { %848 = vmatmul.bf16.vlgmr.msra.gmra.mxu2 %v638_v12  ;;  %1059 = vmatpush.bf16.msrb.mxu0 %v1787_v13 }
 0x134   : > { %891 = vmatmul.bf16.gmra.mxu1 %v643_v17  ;;  %v1786_v17 = vld [vmem:[%s2315_s5 + $0x10] sm:$0xff] }
 0x135   : > { %1060 = vmatpush.bf16.msrb.mxu0 %v1786_v17 }
 0x13c   : > { %853 = vmatmul.bf16.gmra.mxu2 %v641_v22 }
 0x19a   : > { %v868_v28 = vpop.f32.mrf.mxu3 }
 0x1a1   : > { %v887_v30 = vpop.f32.mrf.mxu1 }
 0x1a2   : > { %v870_v35 = vpop.f32.mrf.mxu3 }
 0x1a9   : > { %v889_v36 = vpop.f32.mrf.mxu1 }
 0x1aa   : > { %v873_v45 = vpop.f32.mrf.mxu3 }
 0x1af   : > { %v849_v31 = vpop.f32.mrf.mxu2 }
 0x1b0   : > { %v850_v32 = vadd.f32 %v1859_v29, %v849_v31 }
 0x1b1   : > { %v892_v52 = vpop.f32.mrf.mxu1 }
 0x1b2   : > { %v869_v33 = vadd.f32 %v868_v28, %v850_v32  ;;  %v875_v63 = vpop.f32.mrf.mxu3 }
 0x1b4   : > { %v888_v38 = vadd.f32 %v887_v30, %v869_v33 }
 0x1b6   : > { %v897_v42 = vadd.f32 %v888_v38, %v1950_v4 }
 0x1b7   : > { %v851_v37 = vpop.f32.mrf.mxu2 }
 0x1b8   : > { %v852_v39 = vadd.f32 %v1859_v29, %v851_v37  ;;  %v901_v51 = vrot.slane %v897_v42, 7  ;;  %v913_v1 = vrot.slane %v897_v42, 1 }
 0x1ba   : > { %v871_v40 = vadd.f32 %v870_v35, %v852_v39 }
 0x1bc   : > { %v890_v41 = vadd.f32 %v889_v36, %v871_v40 }
 0x1be   : > { %v898_v43 = vadd.f32 %v890_v41, %v1952_v5 }
 0x1bf   : > { %v854_v46 = vpop.f32.mrf.mxu2 }
 0x1c0   : > { %v855_v48 = vadd.f32 %v1859_v29, %v854_v46  ;;  %v902_v49 = vrot.slane %v898_v43, 7  ;;  %v1848_v50 = vpack.i.bf16 %v898_v43, %v897_v42  ;;  %v914_v60 = vrot.slane %v898_v43, 1  ;;  %v1811_v43 = vld [vmem:[%s2317_s7 + $0x78] sm:$0xff]  ;;  %v1810_v46 = vld [vmem:[%s2317_s7 + $0x70] sm:$0xff] }
 0x1c1   : > { %1342 = vmatpush.bf16.msra.mxu1 %v1811_v43 }
 0x1c2   : > { %v874_v54 = vadd.f32 %v873_v45, %v855_v48  ;;  %1849 = vrot.lane.b32.xlu1 %v1848_v50, %s1870_s27  ;;  %v907_v4 = vsel %vm419_vm4, %v901_v51, %v902_v49  ;;  %v919_v11 = vsel %vm432_vm1, %v913_v1, %v914_v60  ;;  %v1819_v45 = vld [vmem:[%s2317_s7 + $0xb8] sm:$0xff]  ;;  %v1808_v48 = vld [vmem:[%s2317_s7 + $0x60] sm:$0xff]  ;;  %v1818_v50 = vld [vmem:[%s2317_s7 + $0xb0] sm:$0xff] }
 0x1c3   : > { %1820 = vmatpush.bf16.msra.mxu2 %v1819_v45 }
 0x1c4   : > { %v893_v5 = vadd.f32 %v892_v52, %v874_v54  ;;  %v1803_v52 = vld [vmem:[%s2317_s7 + $0x38] sm:$0xff]  ;;  %v1805_v54 = vld [vmem:[%s2317_s7 + $0x48] sm:$0xff] }
 0x1c5   : > { %1343 = vmatpush.bf16.msra.mxu1 %v1810_v46  ;;  %1323 = vmatpush.bf16.msrb.mxu3 %v1803_v52 }
 0x1c6   : > { %v899_v56 = vadd.f32 %v893_v5, %v1963_v9  ;;  %v894_v9 = vpop.f32.mrf.mxu1  ;;  %v1816_v5 = vld [vmem:[%s2317_s7 + $0xa0] sm:$0xff] }
 0x1c7   : > { %v856_v57 = vpop.f32.mrf.mxu2  ;;  %1821 = vmatpush.bf16.msra.mxu2 %v1818_v50 }
 0x1c8   : > { %v915_v58 = vrot.slane %v899_v56, 1  ;;  %v857_v61 = vadd.f32 %v1859_v29, %v856_v57  ;;  %v903_v62 = vrot.slane %v899_v56, 7  ;;  %v1815_v57 = vld [vmem:[%s2317_s7 + $0x98] sm:$0xff] }
 0x1c9   : > { %1344 = vmatpush.bf16.msra.mxu1 %v1809_v47 }
 0x1ca   : > { %v876_v2 = vadd.f32 %v875_v63, %v857_v61  ;;  %v918_v3 = vsel %vm432_vm1, %v914_v60, %v915_v58  ;;  %v906_v6 = vsel %vm419_vm4, %v902_v49, %v903_v62  ;;  %v1807_v49 = vld [vmem:[%s2317_s7 + $0x58] sm:$0xff]  ;;  %v1814_v60 = vld [vmem:[%s2317_s7 + $0x90] sm:$0xff] }
 0x1cb   : > { %v922_v7 = vmul.f32 %v1991_v24, %v918_v3  ;;  %v911_v39 = vmul.f32 %v2035_v59, %v906_v6  ;;  %1822 = vmatpush.bf16.msra.mxu2 %v1817_v53  ;;  %v1799_v61 = vld [vmem:[%s2317_s7 + $0x18] sm:$0xff]  ;;  %v1798_v63 = vld [vmem:[%s2317_s7 + $0x10] sm:$0xff]  ;;  %v1860_v6 = vld [vmem:[%s2316_s6] ss:$0 sm:$0xff] }
 0x1cc   : > { %v895_v8 = vadd.f32 %v894_v9, %v876_v2  ;;  %v1797_v2 = vld [vmem:[%s2317_s7 + $0x8] sm:$0xff]  ;;  %v1796_v9 = vld [vmem:[%s2317_s7] sm:$0xff] }
 0x1cd   : > { %v946_v12 = vpack.c.bf16 %v922_v7, %v919_v11  ;;  %1345 = vmatpush.bf16.msra.mxu1 %v1808_v48 }
 0x1ce   : > { %v900_v14 = vadd.f32 %v895_v8, %v1965_v10  ;;  %v1785_v10 = vld [vmem:[%s2315_s5 + $0x8] sm:$0xff] }
 0x1cf   : > { %1646 = vmatmul.msk.bf16.vlgmr.msrb.gmra.mxu2 %vm457_vm2, %v946_v12  ;;  %1061 = vmatpush.bf16.msrb.mxu0 %v1785_v10 }
 0x1d0   : > { %v904_v15 = vrot.slane %v900_v14, 7  ;;  %v1853_v16 = vpack.i.bf16 %v900_v14, %v899_v56  ;;  %v916_v19 = vrot.slane %v900_v14, 1  ;;  %1823 = vmatpush.bf16.msra.mxu2 %v1816_v5  ;;  %v1801_v56 = vld [vmem:[%s2317_s7 + $0x28] sm:$0xff] }
 0x1d1   : > { %1346 = vmatpush.bf16.msra.mxu1 %v1807_v49 }
 0x1d2   : > { %1854 = vrot.lane.b32.xlu1 %v1853_v16, %s1870_s27  ;;  %v908_v20 = vsel %vm419_vm4, %v904_v15, %v901_v51  ;;  %v905_v21 = vsel %vm419_vm4, %v903_v62, %v904_v15  ;;  %v920_v22 = vsel %vm432_vm1, %v916_v19, %v913_v1  ;;  %v917_v25 = vsel %vm432_vm1, %v915_v58, %v916_v19  ;;  %v1806_v51 = vld [vmem:[%s2317_s7 + $0x50] sm:$0xff]  ;;  %v1800_v58 = vld [vmem:[%s2317_s7 + $0x20] sm:$0xff]  ;;  %v1813_v62 = vld [vmem:[%s2317_s7 + $0x88] sm:$0xff] }
 0x1d3   : > { %v924_v23 = vmul.f32 %v2005_v34, %v920_v22  ;;  %1062 = vmatpush.bf16.msrb.mxu0 %v1784_v27  ;;  %v909_v31 = vmul.f32 %v2023_v44, %v908_v20 }
 0x1d4   : > { %1824 = vmatpush.bf16.msra.mxu2 %v1815_v57 }
 0x1d5   : > { %v948_v26 = vpack.c.bf16 %v924_v23, %v917_v25  ;;  %1347 = vmatpush.bf16.msra.mxu1 %v1806_v51 }
 0x1d7   : > { %1361 = vmatpush.bf16.msra.mxu0 %v1819_v45 }
 0x1d8   : > { %1825 = vmatpush.bf16.msra.mxu2 %v1814_v60 }
 0x1d9   : > { %1348 = vmatpush.bf16.msra.mxu1 %v1805_v54  ;;  %v1861_v54 = vld [vmem:[%s2318_s8] ss:$0 sm:$0xff] }
 0x1db   : > { %1362 = vmatpush.bf16.msra.mxu0 %v1818_v50 }
 0x1dc   : > { %1826 = vmatpush.bf16.msra.mxu2 %v1813_v62 }
 0x1dd   : > { %1349 = vmatpush.bf16.msra.mxu1 %v1804_v55 }
 0x1df   : > { %1647 = vmatmul.msk.bf16.gmra.mxu2 %vm457_vm2, %v948_v26  ;;  %1363 = vmatpush.bf16.msra.mxu0 %v1817_v53 }
 0x1e0   : > { %1827 = vmatpush.bf16.msra.mxu2 %v1812_v0 }
 0x1e3   : > { %1364 = vmatpush.bf16.msra.mxu0 %v1816_v5 }
 0x1e7   : > { %1365 = vmatpush.bf16.msra.mxu0 %v1815_v57 }
 0x1eb   : > { %1366 = vmatpush.bf16.msra.mxu0 %v1814_v60 }
 0x1ef   : > { %1367 = vmatpush.bf16.msra.mxu0 %v1813_v62 }
 0x1f3   : > { %1368 = vmatpush.bf16.msra.mxu0 %v1812_v0 }
 0x234   : > { %v1850_v28 = vpop.permute.xlu1 %1849 }
 0x235   : > { %v1852_v29 = vunpack.i.h.bf16 %v1850_v28  ;;  %v1851_v30 = vunpack.i.l.bf16 %v1850_v28 }
 0x237   : > { %v941_v32 = vsel %vm457_vm2, %v909_v31, %v1851_v30  ;;  %v942_v33 = vsel %vm457_vm2, %v907_v4, %v1852_v29  ;;  %v1802_v4 = vld [vmem:[%s2317_s7 + $0x30] sm:$0xff] }
 0x238   : > { %v945_v35 = vpack.c.bf16 %v942_v33, %v941_v32  ;;  %1324 = vmatpush.bf16.msrb.mxu3 %v1802_v4 }
 0x23a   : > { %1063 = vmatmul.bf16.vlgmr.msrb.gmra.mxu0 %v945_v35 }
 0x23c   : > { %1325 = vmatpush.bf16.msrb.mxu3 %v1801_v56 }
 0x240   : > { %1326 = vmatpush.bf16.msrb.mxu3 %v1800_v58 }
 0x244   : > { %v1855_v36 = vpop.permute.xlu1 %1854  ;;  %1327 = vmatpush.bf16.msrb.mxu3 %v1799_v61 }
 0x245   : > { %v1857_v37 = vunpack.i.h.bf16 %v1855_v36  ;;  %v1856_v38 = vunpack.i.l.bf16 %v1855_v36 }
 0x247   : > { %v943_v40 = vsel %vm457_vm2, %v911_v39, %v1856_v38  ;;  %v944_v41 = vsel %vm457_vm2, %v905_v21, %v1857_v37 }
 0x248   : > { %v947_v42 = vpack.c.bf16 %v944_v41, %v943_v40  ;;  %1328 = vmatpush.bf16.msrb.mxu3 %v1798_v63 }
 0x24a   : > { %1068 = vmatmul.bf16.gmra.mxu0 %v947_v42 }
 0x24c   : > { %1329 = vmatpush.bf16.msrb.mxu3 %v1797_v2 }
 0x250   : > { %1330 = vmatpush.bf16.msrb.mxu3 %v1796_v9 }
 0x252   : > { %v1083_v1 = vpop.f32.mrf.mxu2 }
 0x25a   : > { %v1085_v8 = vpop.f32.mrf.mxu2 }
 0x262   : > { %v1088_v19 = vpop.f32.mrf.mxu2 }
 0x26a   : > { %v1090_v30 = vpop.f32.mrf.mxu2 }
 0x2b7   : > { %v1064_v3 = vpop.f32.mrf.mxu0 }
 0x2b8   : > { %v1065_v7 = vadd.f32 %v1860_v6, %v1064_v3 }
 0x2ba   : > { %v1084_v12 = vadd.f32 %v1083_v1, %v1065_v7 }
 0x2bc   : > { %v1093_v15 = vmax.f32 %v1084_v12, 0.0 }
 0x2be   : > { %v1109_v27 = vrot.slane %v1093_v15, 1  ;;  %v1097_v37 = vrot.slane %v1093_v15, 7 }
 0x2bf   : > { %v1066_v11 = vpop.f32.mrf.mxu0 }
 0x2c0   : > { %v1067_v13 = vadd.f32 %v1860_v6, %v1066_v11 }
 0x2c2   : > { %v1086_v14 = vadd.f32 %v1085_v8, %v1067_v13 }
 0x2c4   : > { %v1094_v16 = vmax.f32 %v1086_v14, 0.0 }
 0x2c6   : > { %v1122_v17 = vpack.c.bf16 %v1094_v16, %v1093_v15  ;;  %v1110_v23 = vrot.slane %v1094_v16, 1  ;;  %v1098_v38 = vrot.slane %v1094_v16, 7 }
 0x2c7   : > { %v1069_v20 = vpop.f32.mrf.mxu0 }
 0x2c8   : > { %v1070_v21 = vadd.f32 %v1860_v6, %v1069_v20  ;;  %1350 = vmatmul.bf16.vlgmr.msra.gmra.mxu1 %v1122_v17  ;;  %v1115_v33 = vsel %vm432_vm1, %v1109_v27, %v1110_v23  ;;  %v1103_v46 = vsel %vm419_vm4, %v1097_v37, %v1098_v38 }
 0x2ca   : > { %v1089_v10 = vadd.f32 %v1088_v19, %v1070_v21 }
 0x2cc   : > { %v1095_v22 = vmax.f32 %v1089_v10, 0.0 }
 0x2ce   : > { %v1111_v25 = vrot.slane %v1095_v22, 1  ;;  %v1099_v50 = vrot.slane %v1095_v22, 7 }
 0x2cf   : > { %v1071_v26 = vpop.f32.mrf.mxu0 }
 0x2d0   : > { %v1072_v28 = vadd.f32 %v1860_v6, %v1071_v26  ;;  %v1114_v29 = vsel %vm432_vm1, %v1110_v23, %v1111_v25  ;;  %v1102_v51 = vsel %vm419_vm4, %v1098_v38, %v1099_v50 }
 0x2d1   : > { %v1118_v31 = vmul.f32 %v1991_v24, %v1114_v29 }
 0x2d2   : > { %v1091_v32 = vadd.f32 %v1090_v30, %v1072_v28 }
 0x2d3   : > { %v1123_v35 = vpack.c.bf16 %v1118_v31, %v1115_v33 }
 0x2d4   : > { %v1096_v36 = vmax.f32 %v1091_v32, 0.0 }
 0x2d5   : > { %1369 = vmatmul.bf16.vlgmr.msra.gmra.mxu0 %v1123_v35 }
 0x2d6   : > { %v1100_v39 = vrot.slane %v1096_v36, 7  ;;  %v1112_v40 = vrot.slane %v1096_v36, 1  ;;  %v1125_v41 = vpack.c.bf16 %v1096_v36, %v1095_v22 }
 0x2d8   : > { %1355 = vmatmul.bf16.gmra.mxu1 %v1125_v41  ;;  %v1104_v42 = vsel %vm419_vm4, %v1100_v39, %v1097_v37  ;;  %v1116_v43 = vsel %vm432_vm1, %v1112_v40, %v1109_v27  ;;  %v1113_v47 = vsel %vm432_vm1, %v1111_v25, %v1112_v40 }
 0x2d9   : > { %v1105_v24 = vmul.f32 %v2023_v44, %v1104_v42  ;;  %v1120_v45 = vmul.f32 %v2005_v34, %v1116_v43  ;;  %v1101_v44 = vsel %vm419_vm4, %v1099_v50, %v1100_v39  ;;  %v1107_v34 = vmul.f32 %v2035_v59, %v1102_v51 }
 0x2db   : > { %v1121_v48 = vpack.c.bf16 %v1103_v46, %v1105_v24  ;;  %v1126_v49 = vpack.c.bf16 %v1120_v45, %v1113_v47  ;;  %v1124_v52 = vpack.c.bf16 %v1101_v44, %v1107_v34 }
 0x2dd   : > { %1331 = vmatmul.bf16.vlgmr.msrb.gmra.mxu3 %v1121_v48  ;;  %1374 = vmatmul.bf16.vlgmr.msra.gmra.mxu2 %v1126_v49 }
 0x2ed   : > { %1336 = vmatmul.bf16.gmra.mxu3 %v1124_v52 }
 0x345   : > { %v1351_v53 = vpop.f32.mrf.mxu1 }
 0x34d   : > { %v1353_v57 = vpop.f32.mrf.mxu1 }
 0x352   : > { %v1370_v55 = vpop.f32.mrf.mxu0 }
 0x355   : > { %v1356_v63 = vpop.f32.mrf.mxu1 }
 0x35a   : > { %v1372_v61 = vpop.f32.mrf.mxu0 }
 0x35d   : > { %v1358_v8 = vpop.f32.mrf.mxu1 }
 0x360   : > { %v1332_v4 = vpop.f32.mrf.mxu3  ;;  %v1375_v2 = vpop.f32.mrf.mxu2 }
 0x361   : > { %v1333_v5 = vadd.f32 %v1861_v54, %v1332_v4 }
 0x363   : > { %v1352_v56 = vadd.f32 %v1351_v53, %v1333_v5 }
 0x365   : > { %v1371_v18 = vadd.f32 %v1370_v55, %v1352_v56 }
 0x367   : > { %1380 = vst [vmem:[%s332_s11] sm:$0xff] %v1371_v18 }
 0x368   : > { %v1334_v59 = vpop.f32.mrf.mxu3  ;;  %v1377_v12 = vpop.f32.mrf.mxu2 }
 0x369   : > { %v1335_v58 = vadd.f32 %v1861_v54, %v1334_v59 }
 0x36b   : > { %v1354_v60 = vadd.f32 %v1353_v57, %v1335_v58 }
 0x36d   : > { %v1373_v62 = vadd.f32 %v1372_v61, %v1354_v60 }
 0x36f   : > { %1381 = vst [vmem:[%s332_s11 + $0x8] sm:$0xff] %v1373_v62 }
 0x370   : > { %v1337_v0 = vpop.f32.mrf.mxu3 }
 0x371   : > { %v1338_v1 = vadd.f32 %v1861_v54, %v1337_v0 }
 0x373   : > { %v1357_v3 = vadd.f32 %v1356_v63, %v1338_v1 }
 0x375   : > { %v1376_v6 = vadd.f32 %v1375_v2, %v1357_v3 }
 0x377   : > { %1382 = vst [vmem:[%s332_s11 + $0x10] sm:$0xff] %v1376_v6 }
 0x378   : > { %v1339_v9 = vpop.f32.mrf.mxu3 }
 0x379   : > { %v1340_v7 = vadd.f32 %v1861_v54, %v1339_v9 }
 0x37b   : > { %v1359_v11 = vadd.f32 %v1358_v8, %v1340_v7 }
 0x37d   : > { %v1378_v13 = vadd.f32 %v1377_v12, %v1359_v11 }
 0x37f   : > { %1383 = vst [vmem:[%s332_s11 + $0x18] sm:$0xff] %v1378_v13 }
 0x380 PF: > { %s19_s30 = sadd.s32 1, %s1868_s30  }
 0x381   : > { %p16_p4 = scmp.ge.s32.totalorder %s19_s30, 4  }
 0x383   :  { %18 = sbr.rel (!%p16_p4) target bundleno = 1 (0x1), region = 86 }

</bundles_post_ra>
